<compile_context>
chip_gen: v7x
topology: tpu7x:2x2x1
jax: 0.10.0
libtpu: 0.0.40
codegen_flags: <defaults>
</compile_context>

<pallas_src>
import functools

import jax
import jax.numpy as jnp
from jax.experimental import pallas as pl
from jax.experimental.pallas import tpu as pltpu


def _round_up(x, m):
    return ((x + m - 1) // m) * m


def _ffn_kernel(x_ref, w_in_ref, b_in_ref, w_out_ref, b_out_ref, o_ref, acc_ref):
    f = pl.program_id(1)

    @pl.when(f == 0)
    def _init():
        acc_ref[...] = jnp.zeros_like(acc_ref)

    # First linear over this F-chunk: (tm, Hp) @ (Hp, tf) -> f32 accumulate on the MXU.
    h = jnp.dot(x_ref[...], w_in_ref[...], preferred_element_type=jnp.float32)
    h = h + b_in_ref[...]

    # Exact erf-based GELU in float32 (torch.nn.GELU() default). Padded F columns give
    # GELU(0) = 0 and hit zero rows of W_out^T, so they contribute nothing.
    inv_sqrt2 = jnp.float32(0.7071067811865476)
    h = 0.5 * h * (1.0 + jax.lax.erf(h * inv_sqrt2))

    # Second linear, partial sum over this F-chunk: (tm, tf) @ (tf, Hp) -> f32 accumulator.
    acc_ref[...] += jnp.dot(h.astype(w_out_ref.dtype), w_out_ref[...],
                            preferred_element_type=jnp.float32)

    @pl.when(f == pl.num_programs(1) - 1)
    def _finalize():
        o_ref[...] = (acc_ref[...] + b_out_ref[...]).astype(o_ref.dtype)


@functools.partial(jax.jit, static_argnames=("tile_m", "tile_f", "compute_dtype"))
def position_wise_feed_forward(h_V, W_in, b_in, W_out, b_out, *,
                               tile_m=256, tile_f=512,
                               compute_dtype=jnp.bfloat16):
    """h_V: (..., H). W_in: (F, H), b_in: (F,), W_out: (H, F), b_out: (H,)."""
    orig_shape = h_V.shape
    H = orig_shape[-1]
    F = W_in.shape[0]

    x = h_V.reshape(-1, H)                       # (M, H)
    M = x.shape[0]

    # --- tile selection (all static, derived from shapes) -------------------------------
    tile_m = max(16, _round_up(tile_m, 16))
    # Cap tile_m so small problems still produce >=2 grid steps (use both TCs on v7x).
    half_m = _round_up(max((M + 1) // 2, 16), 16)
    tile_m = min(tile_m, half_m)

    Hp = _round_up(H, 128)                       # lane-dense output / matmul N dims
    tile_f = max(128, _round_up(min(tile_f, _round_up(F, 128)), 128))
    Fp = _round_up(F, tile_f)
    Mp = _round_up(M, tile_m)

    grid_m = Mp // tile_m
    grid_f = Fp // tile_f

    # --- pad + cast operands once in the wrapper ----------------------------------------
    x_p = jnp.pad(x, ((0, Mp - M), (0, Hp - H))).astype(compute_dtype)          # (Mp, Hp)
    w_in_t = jnp.pad(W_in.T, ((0, Hp - H), (0, Fp - F))).astype(compute_dtype)  # (Hp, Fp)
    w_out_t = jnp.pad(W_out.T, ((0, Fp - F), (0, Hp - H))).astype(compute_dtype)  # (Fp, Hp)
    b_in_p = jnp.pad(b_in, (0, Fp - F)).reshape(1, Fp).astype(jnp.float32)
    b_out_p = jnp.pad(b_out, (0, Hp - H)).reshape(1, Hp).astype(jnp.float32)

    # --- cost estimate (advisory, helps XLA schedule around the custom call) ------------
    c_sz = jnp.dtype(compute_dtype).itemsize
    o_sz = jnp.dtype(h_V.dtype).itemsize
    cost = pl.CostEstimate(
        flops=int(4 * M * H * F),                       # two matmuls
        transcendentals=int(M * F),                     # erf
        bytes_accessed=int(Mp * Hp * c_sz               # activations (fetched once per row tile)
                           + grid_m * 2 * Hp * Fp * c_sz  # weight slabs streamed per row tile
                           + (Fp + Hp) * 4               # biases
                           + Mp * Hp * o_sz),            # output
    )

    out_p = pl.pallas_call(
        _ffn_kernel,
        out_shape=jax.ShapeDtypeStruct((Mp, Hp), h_V.dtype),
        grid_spec=pltpu.PrefetchScalarGridSpec(
            num_scalar_prefetch=0,
            grid=(grid_m, grid_f),
            in_specs=[
                pl.BlockSpec((tile_m, Hp), lambda i, f: (i, 0)),   # x tile (resident across f)
                pl.BlockSpec((Hp, tile_f), lambda i, f: (0, f)),   # W_in^T chunk
                pl.BlockSpec((1, tile_f), lambda i, f: (0, f)),    # b_in chunk
                pl.BlockSpec((tile_f, Hp), lambda i, f: (f, 0)),   # W_out^T chunk
                pl.BlockSpec((1, Hp), lambda i, f: (0, 0)),        # b_out (constant)
            ],
            out_specs=pl.BlockSpec((tile_m, Hp), lambda i, f: (i, 0)),
            scratch_shapes=[pltpu.VMEM((tile_m, Hp), jnp.float32)],
        ),
        compiler_params=pltpu.CompilerParams(
            dimension_semantics=("parallel", "arbitrary"),
            vmem_limit_bytes=48 * 1024 * 1024,
        ),
        cost_estimate=cost,
    )(x_p, w_in_t, b_in_p, w_out_t, b_out_p)

    return out_p[:M, :H].reshape(orig_shape)


def _reference(h_V, W_in, b_in, W_out, b_out):
    h = h_V @ W_in.T + b_in
    h = jax.nn.gelu(h, approximate=False)
    return h @ W_out.T + b_out


if __name__ == "__main__":
    # Small shapes consistent with the module's forward: (B, L, num_hidden).
    B, L = 2, 64
    num_hidden, num_ff = 32, 64

    key = jax.random.PRNGKey(0)
    k1, k2, k3, k4, k5 = jax.random.split(key, 5)

    h_V = jax.random.normal(k1, (B, L, num_hidden), dtype=jnp.float32)
    # nn.Linear param shapes: weight (out_features, in_features), bias (out_features,).
    W_in = jax.random.normal(k2, (num_ff, num_hidden), dtype=jnp.float32) * 0.1
    b_in = jax.random.normal(k3, (num_ff,), dtype=jnp.float32) * 0.1
    W_out = jax.random.normal(k4, (num_hidden, num_ff), dtype=jnp.float32) * 0.1
    b_out = jax.random.normal(k5, (num_hidden,), dtype=jnp.float32) * 0.1

    out = position_wise_feed_forward(h_V, W_in, b_in, W_out, b_out)
    out = jax.block_until_ready(out)

    ref = _reference(h_V, W_in, b_in, W_out, b_out)
    assert out.shape == h_V.shape
    # bf16 MXU operands with f32 accumulation -> widened tolerance vs. pure-f32 reference.
    assert jnp.allclose(out, ref, atol=2e-2, rtol=2e-2), (
        "mismatch vs reference, max abs err = %.3e" % float(jnp.max(jnp.abs(out - ref))))

    print("KERNEL_OK")
</pallas_src>

<mosaic_0001>
module attributes {stable_mosaic.version = 11 : i64} {
  func.func @_ffn_kernel(%arg0: i32, %arg1: i32, %arg2: memref<64x128xbf16, #tpu.memory_space<vmem>>, %arg3: memref<128x128xbf16, #tpu.memory_space<vmem>>, %arg4: memref<1x128xf32, #tpu.memory_space<vmem>>, %arg5: memref<128x128xbf16, #tpu.memory_space<vmem>>, %arg6: memref<1x128xf32, #tpu.memory_space<vmem>>, %arg7: memref<64x128xf32, #tpu.memory_space<vmem>>, %arg8: memref<64x128xf32, #tpu.memory_space<vmem>>) attributes {dimension_semantics = [#tpu.dimension_semantics<parallel>, #tpu.dimension_semantics<arbitrary>], iteration_bounds = array<i64: 2, 1>, scalar_prefetch = 0 : i64, scratch_operands = 1 : i64, tpu.core_type = #tpu.core_type<tc>, window_params = [{transform_indices = @transform_0, window_bounds = array<i64: 64, 128>}, {transform_indices = @transform_1, window_bounds = array<i64: 128, 128>}, {transform_indices = @transform_2, window_bounds = array<i64: 1, 128>}, {transform_indices = @transform_3, window_bounds = array<i64: 128, 128>}, {pipeline_mode = #tpu.pipeline_mode<synchronous>, transform_indices = @transform_4, window_bounds = array<i64: 1, 128>}, {transform_indices = @transform_5, window_bounds = array<i64: 64, 128>}]} {
    %c0_i32 = arith.constant 0 : i32
    %0 = arith.cmpi eq, %arg1, %c0_i32 : i32
    %1 = arith.extui %0 : i1 to i32
    %c0_i32_0 = arith.constant 0 : i32
    %2 = arith.cmpi ne, %1, %c0_i32_0 : i32
    scf.if %2 {
      %cst_18 = arith.constant 0.000000e+00 : f32
      %26 = vector.broadcast %cst_18 : f32 to vector<64x128xf32>
      %c0_19 = arith.constant 0 : index
      %c0_20 = arith.constant 0 : index
      %27 = vector.load %arg8[%c0_19, %c0_20] : memref<64x128xf32, #tpu.memory_space<vmem>>, vector<64x128xf32>
      tpu.vector_store %arg8[%c0_19, %c0_20], %26 {strides = array<i32>} : memref<64x128xf32, #tpu.memory_space<vmem>>, vector<64x128xf32>,
    } else {
    }
    %c0 = arith.constant 0 : index
    %c0_1 = arith.constant 0 : index
    %3 = vector.load %arg2[%c0, %c0_1] : memref<64x128xbf16, #tpu.memory_space<vmem>>, vector<64x128xbf16>
    %c0_2 = arith.constant 0 : index
    %c0_3 = arith.constant 0 : index
    %4 = vector.load %arg3[%c0_2, %c0_3] : memref<128x128xbf16, #tpu.memory_space<vmem>>, vector<128x128xbf16>
    %cst = arith.constant dense<0.000000e+00> : vector<64x128xf32>
    %5 = tpu.matmul %3, %4, %cst {dimension_numbers = #tpu.dot_dimension_numbers<[1], [0], [0], [1], [0, 0, 1, 1], [], []>} : vector<64x128xbf16>, vector<128x128xbf16>, vector<64x128xf32> -> vector<64x128xf32>
    %c0_4 = arith.constant 0 : index
    %c0_5 = arith.constant 0 : index
    %6 = vector.load %arg4[%c0_4, %c0_5] : memref<1x128xf32, #tpu.memory_space<vmem>>, vector<1x128xf32>
    %7 = vector.broadcast %6 : vector<1x128xf32> to vector<64x128xf32>
    %8 = arith.addf %5, %7 : vector<64x128xf32>
    %cst_6 = arith.constant 5.000000e-01 : f32
    %9 = vector.broadcast %cst_6 : f32 to vector<64x128xf32>
    %10 = arith.mulf %9, %8 : vector<64x128xf32>
    %cst_7 = arith.constant 0.707106769 : f32
    %11 = vector.broadcast %cst_7 : f32 to vector<64x128xf32>
    %12 = arith.mulf %8, %11 : vector<64x128xf32>
    %13 = math.erf %12 : vector<64x128xf32>
    %cst_8 = arith.constant 1.000000e+00 : f32
    %14 = vector.broadcast %cst_8 : f32 to vector<64x128xf32>
    %15 = arith.addf %14, %13 : vector<64x128xf32>
    %16 = arith.mulf %10, %15 : vector<64x128xf32>
    %c0_9 = arith.constant 0 : index
    %c0_10 = arith.constant 0 : index
    %17 = vector.load %arg8[%c0_9, %c0_10] : memref<64x128xf32, #tpu.memory_space<vmem>>, vector<64x128xf32>
    %18 = arith.truncf %16 : vector<64x128xf32> to vector<64x128xbf16>
    %c0_11 = arith.constant 0 : index
    %c0_12 = arith.constant 0 : index
    %19 = vector.load %arg5[%c0_11, %c0_12] : memref<128x128xbf16, #tpu.memory_space<vmem>>, vector<128x128xbf16>
    %cst_13 = arith.constant dense<0.000000e+00> : vector<64x128xf32>
    %20 = tpu.matmul %18, %19, %cst_13 {dimension_numbers = #tpu.dot_dimension_numbers<[1], [0], [0], [1], [0, 0, 1, 1], [], []>} : vector<64x128xbf16>, vector<128x128xbf16>, vector<64x128xf32> -> vector<64x128xf32>
    %21 = arith.addf %17, %20 : vector<64x128xf32>
    %c0_14 = arith.constant 0 : index
    %c0_15 = arith.constant 0 : index
    %22 = vector.load %arg8[%c0_14, %c0_15] : memref<64x128xf32, #tpu.memory_space<vmem>>, vector<64x128xf32>
    tpu.vector_store %arg8[%c0_14, %c0_15], %21 {strides = array<i32>} : memref<64x128xf32, #tpu.memory_space<vmem>>, vector<64x128xf32>,
    %c0_i32_16 = arith.constant 0 : i32
    %23 = arith.cmpi eq, %arg1, %c0_i32_16 : i32
    %24 = arith.extui %23 : i1 to i32
    %c0_i32_17 = arith.constant 0 : i32
    %25 = arith.cmpi ne, %24, %c0_i32_17 : i32
    scf.if %25 {
      %c0_18 = arith.constant 0 : index
      %c0_19 = arith.constant 0 : index
      %26 = vector.load %arg8[%c0_18, %c0_19] : memref<64x128xf32, #tpu.memory_space<vmem>>, vector<64x128xf32>
      %c0_20 = arith.constant 0 : index
      %c0_21 = arith.constant 0 : index
      %27 = vector.load %arg6[%c0_20, %c0_21] : memref<1x128xf32, #tpu.memory_space<vmem>>, vector<1x128xf32>
      %28 = vector.broadcast %27 : vector<1x128xf32> to vector<64x128xf32>
      %29 = arith.addf %26, %28 : vector<64x128xf32>
      %c0_22 = arith.constant 0 : index
      %c0_23 = arith.constant 0 : index
      %30 = vector.load %arg7[%c0_22, %c0_23] : memref<64x128xf32, #tpu.memory_space<vmem>>, vector<64x128xf32>
      tpu.vector_store %arg7[%c0_22, %c0_23], %29 {strides = array<i32>} : memref<64x128xf32, #tpu.memory_space<vmem>>, vector<64x128xf32>,
    } else {
    }
    return
  }
  func.func @transform_0(%arg0: i32, %arg1: i32) -> (i32, i32) {
    %c0_i32 = arith.constant 0 : i32
    %c0_i32_0 = arith.constant 0 : i32
    return %arg0, %c0_i32 : i32, i32
  }
  func.func @transform_1(%arg0: i32, %arg1: i32) -> (i32, i32) {
    %c0_i32 = arith.constant 0 : i32
    %c0_i32_0 = arith.constant 0 : i32
    return %c0_i32, %arg1 : i32, i32
  }
  func.func @transform_2(%arg0: i32, %arg1: i32) -> (i32, i32) {
    %c0_i32 = arith.constant 0 : i32
    %c0_i32_0 = arith.constant 0 : i32
    return %c0_i32, %arg1 : i32, i32
  }
  func.func @transform_3(%arg0: i32, %arg1: i32) -> (i32, i32) {
    %c0_i32 = arith.constant 0 : i32
    %c0_i32_0 = arith.constant 0 : i32
    return %arg1, %c0_i32 : i32, i32
  }
  func.func @transform_4(%arg0: i32, %arg1: i32) -> (i32, i32) {
    %c0_i32 = arith.constant 0 : i32
    %c0_i32_0 = arith.constant 0 : i32
    %c0_i32_1 = arith.constant 0 : i32
    return %c0_i32, %c0_i32_0 : i32, i32
  }
  func.func @transform_5(%arg0: i32, %arg1: i32) -> (i32, i32) {
    %c0_i32 = arith.constant 0 : i32
    %c0_i32_0 = arith.constant 0 : i32
    return %arg0, %c0_i32 : i32, i32
  }
}

</mosaic_0001>

<bundles_post_ra>
// kernel: position_wise_feed_forward.1
= control target key start
LH: loop header
LB: loop body
LE: loop exit
PB: predicated region body
PF: predicated region fallthrough
CT: control target
= control target key end

     0   :  { %s1034_s18 = smov 0   ;;  %s1036_s19 = smov 0   ;;  %s1131_s0 = inlined_call_operand.vmem [shape: bf16[128,128], index: 0, kind: input, shape index: {}]   ;;  %s1132_s1 = inlined_call_operand.vmem [shape: bf16[128,128], index: 1, kind: input, shape index: {}]   ;;  %s1133_s2 = inlined_call_operand.vmem [shape: f32[1,128], index: 2, kind: input, shape index: {}]   ;;  %s1134_s3 = inlined_call_operand.vmem [shape: bf16[128,128], index: 3, kind: input, shape index: {}]   ;;  %s1135_s4 = inlined_call_operand.vmem [shape: f32[1,128], index: 4, kind: input, shape index: {}]   ;;  %s1136_s5 = inlined_call_operand.vmem [shape: f32[128,128], index: 5, kind: output, shape index: {}]  }
   0x1   :  { %s1038_s20 = smov 0  }
   0x2 LB: > { %s27_s21 = sadd.s32 1, %s998_s19  ;;  %p819_p0 = scmp.ge.s32.totalorder %s1002_s20, 1  ;;  %s1002_s20 = sphi %s1038_s20, %s15_s20   ;;  %s998_s19 = sphi %s1036_s19, %s1138_s19   ;;  %s994_s18 = sphi %s1034_s18, %s1137_s18  }
   0x3   : > { %p29_p1 = scmp.ge.s32.totalorder %s27_s21, 2  ;;  %p228_p2 = scmp.lt.s32.totalorder %s1002_s20, 3 }
   0x5   : > { %s1140_s21 = smov (%p29_p1, %s27_s21), 0  ;;  %p229_p3 = pnand %p819_p0, %p228_p2 }
   0x6   : > { %v944_v0 = vld [vmem:[%s1132_s1] sm:$0xff] (!%p229_p3)   ;;  %s820_s24 = sshll.u32 (!%p229_p3), %s994_s18, 3  ;;  %v945_v1 = vld [vmem:[%s1132_s1 + $0x8] sm:$0xff] (!%p229_p3)   ;;  %v946_v2 = vld [vmem:[%s1132_s1 + $0x10] sm:$0xff] (!%p229_p3)  }
   0x7   : > { %232 = sbr.rel (%p229_p3) target bundleno = 502 (0x1f6), region = 40  ;;  %p269_p4 = scmp.lt.s32.totalorder (!%p229_p3), %s820_s24, 15  ;;  %872 = vmatprep.subr.bf16.mxu0 (!%p229_p3), %v944_v0  ;;  %v947_v3 = vld [vmem:[%s1132_s1 + $0x18] sm:$0xff] (!%p229_p3)   ;;  %v948_v5 = vld [vmem:[%s1132_s1 + $0x20] sm:$0xff] (!%p229_p3)   ;;  %v957_v7 = vld [vmem:[%s1134_s3 + $0x8] sm:$0xff] (!%p229_p3)  }
   0x8   : > { %873 = vmatpush3.bf16.msra.mxu0 (!%p229_p3), %v944_v0  ;;  %v956_v6 = vld [vmem:[%s1134_s3] sm:$0xff] (!%p229_p3)   ;;  %v949_v8 = vld [vmem:[%s1132_s1 + $0x28] sm:$0xff] (!%p229_p3)   ;;  %v950_v9 = vld [vmem:[%s1132_s1 + $0x30] sm:$0xff] (!%p229_p3)  }
   0x9   : > { %874 = vmatprep.subr.bf16.mxu0 (!%p229_p3), %v945_v1  ;;  %896 = vmatprep.subr.bf16.mxu1 (!%p229_p3), %v956_v6  ;;  %v951_v10 = vld [vmem:[%s1132_s1 + $0x38] sm:$0xff] (!%p229_p3)   ;;  %v958_v14 = vld [vmem:[%s1134_s3 + $0x10] sm:$0xff] (!%p229_p3)   ;;  %v960_v16 = vld [vmem:[%s1134_s3 + $0x20] sm:$0xff] (!%p229_p3)  }
   0xa   : > { %897 = vmatpush3.bf16.msra.mxu1 (!%p229_p3), %v956_v6  ;;  %v959_v15 = vld [vmem:[%s1134_s3 + $0x18] sm:$0xff] (!%p229_p3)   ;;  %v961_v17 = vld [vmem:[%s1134_s3 + $0x28] sm:$0xff] (!%p229_p3)   ;;  %v962_v18 = vld [vmem:[%s1134_s3 + $0x30] sm:$0xff] (!%p229_p3)  }
   0xb   : > { %898 = vmatprep.subr.bf16.mxu1 (!%p229_p3), %v957_v7  ;;  %v963_v19 = vld [vmem:[%s1134_s3 + $0x38] sm:$0xff] (!%p229_p3)   ;;  %v824_v20 = vld [vmem:[%s1133_s2] ss:$0 sm:$0xff] (!%p229_p3) }
   0xc   : > { %875 = vmatpush3.bf16.msra.mxu0 (!%p229_p3), %v945_v1 }
   0xd   : > { %876 = vmatprep.subr.bf16.mxu0 (!%p229_p3), %v946_v2 }
   0xe   : > { %s1142_s24 = smov (!%p269_p4, %s820_s24), 15  ;;  %899 = vmatpush3.bf16.msra.mxu1 %v957_v7 }
   0xf   : > { %s821_s29 = sshll.u32 %s1142_s24, 2  ;;  %900 = vmatprep.subr.bf16.mxu1 %v958_v14  ;;  %s823_s15 = sshll.u32 %s1142_s24, 3 }
  0x10   : > { %s1067_s7 = scalar_lea.vmem %s1131_s0, %s821_s29  ;;  %877 = vmatpush3.bf16.msra.mxu0 %v946_v2  ;;  %s291_s23 = scalar_lea.vmem %s1136_s5, %s823_s15 }
  0x11   : > { %v952_v4 = vld [vmem:[%s1067_s7] sm:$0xff]   ;;  %878 = vmatprep.subr.bf16.mxu0 %v947_v3  ;;  %v953_v11 = vld [vmem:[%s1067_s7 + $0x8] sm:$0xff]   ;;  %v954_v12 = vld [vmem:[%s1067_s7 + $0x10] sm:$0xff]  }
  0x12   : > { %888 = vmatprep.mubr.bf16.mxu0 %v952_v4  ;;  %v955_v13 = vld [vmem:[%s1067_s7 + $0x18] sm:$0xff]   ;;  %901 = vmatpush3.bf16.msra.mxu1 %v958_v14 }
  0x13   : > { %902 = vmatprep.subr.bf16.mxu1 %v959_v15 }
  0x14   : > { %879 = vmatpush3.bf16.msra.mxu0 %v947_v3 }
  0x15   : > { %880 = vmatprep.subr.bf16.mxu0 %v948_v5 }
  0x16   : > { %903 = vmatpush3.bf16.msra.mxu1 %v959_v15 }
  0x17   : > { %904 = vmatprep.subr.bf16.mxu1 %v960_v16 }
  0x18   : > { %881 = vmatpush3.bf16.msra.mxu0 %v948_v5 }
  0x19   : > { %882 = vmatprep.subr.bf16.mxu0 %v949_v8 }
  0x1a   : > { %905 = vmatpush3.bf16.msra.mxu1 %v960_v16 }
  0x1b   : > { %906 = vmatprep.subr.bf16.mxu1 %v961_v17 }
  0x1c   : > { %883 = vmatpush3.bf16.msra.mxu0 %v949_v8 }
  0x1d   : > { %884 = vmatprep.subr.bf16.mxu0 %v950_v9 }
  0x1e   : > { %907 = vmatpush3.bf16.msra.mxu1 %v961_v17  ;;  %v845_v17 = vld [vmem:[%s1135_s4] ss:$0 sm:$0xff] }
  0x1f   : > { %908 = vmatprep.subr.bf16.mxu1 %v962_v18 }
  0x20   : > { %885 = vmatpush3.bf16.msra.mxu0 %v950_v9 }
  0x21   : > { %886 = vmatprep.subr.bf16.mxu0 %v951_v10 }
  0x22   : > { %909 = vmatpush3.bf16.msra.mxu1 %v962_v18 }
  0x23   : > { %910 = vmatprep.subr.bf16.mxu1 %v963_v19 }
  0x24   : > { %887 = vmatpush3.bf16.msra.mxu0 %v951_v10 }
  0x26   : > { %911 = vmatpush3.bf16.msra.mxu1 %v963_v19 }
  0x27   : > { %889 = vmatmul.mubr.bf16.vlgmr.msra.gmra.mrb[0].mxu0 %v953_v11 }
  0x28   : > { %892 = vmatprep.mubr.bf16.mxu0 %v954_v12 }
  0x2f   : > { %893 = vmatmul.mubr.bf16.gmra.mrb[4].mxu0 %v955_v13 }
  0xfa   : > { %v890_v21 = vpop.f32.mrb[0].mxu0 }
  0xfb   : > { %v452_v22 = vadd.f32 %v890_v21, %v824_v20  ;;  %v443_v23 = vpop.f32.mrb[1].mxu0 }
  0xfc   : > { %v444_v24 = vadd.f32 %v824_v20, %v443_v23  ;;  %v891_v25 = vpop.f32.mrb[2].mxu0 }
  0xfd   : > { %v484_v26 = vmul.f32 0.70710677, %v452_v22  ;;  %v455_v27 = vadd.f32 %v891_v25, %v824_v20  ;;  %v446_v28 = vpop.f32.mrb[3].mxu0  ;;  %v476_v51 = vmul.f32 0.5, %v452_v22 }
  0xfe   : > { %v482_v29 = vmul.f32 0.70710677, %v444_v24  ;;  %v447_v30 = vadd.f32 %v824_v20, %v446_v28  ;;  %v474_v54 = vmul.f32 0.5, %v444_v24 }
  0xff   : > { %964 = verf.f32 %v484_v26  ;;  %v485_v31 = vmul.f32 0.70710677, %v455_v27  ;;  %v477_v52 = vmul.f32 0.5, %v455_v27 }
 0x100   : > { %966 = verf.f32 %v482_v29  ;;  %v483_v32 = vmul.f32 0.70710677, %v447_v30  ;;  %v475_v55 = vmul.f32 0.5, %v447_v30 }
 0x101   : > { %968 = verf.f32 %v485_v31 }
 0x102   : > { %970 = verf.f32 %v483_v32  ;;  %v894_v33 = vpop.f32.mrb[4].mxu0 }
 0x103   : > { %v468_v34 = vadd.f32 %v894_v33, %v824_v20  ;;  %v459_v35 = vpop.f32.mrb[5].mxu0 }
 0x104   : > { %v460_v36 = vadd.f32 %v824_v20, %v459_v35  ;;  %v895_v37 = vpop.f32.mrb[6].mxu0 }
 0x105   : > { %v488_v38 = vmul.f32 0.70710677, %v468_v34  ;;  %v471_v39 = vadd.f32 %v895_v37, %v824_v20  ;;  %v462_v40 = vpop.f32.mrb[7].mxu0  ;;  %v480_v5 = vmul.f32 0.5, %v468_v34 }
 0x106   : > { %v486_v41 = vmul.f32 0.70710677, %v460_v36  ;;  %v463_v42 = vadd.f32 %v824_v20, %v462_v40  ;;  %v478_v8 = vmul.f32 0.5, %v460_v36 }
 0x107   : > { %972 = verf.f32 %v488_v38  ;;  %v489_v43 = vmul.f32 0.70710677, %v471_v39  ;;  %v481_v6 = vmul.f32 0.5, %v471_v39 }
 0x108   : > { %974 = verf.f32 %v486_v41  ;;  %v487_v44 = vmul.f32 0.70710677, %v463_v42  ;;  %v479_v9 = vmul.f32 0.5, %v463_v42 }
 0x109   : > { %v965_v45 = vpop.eup %964  ;;  %976 = verf.f32 %v489_v43 }
 0x10a   : > { %v967_v46 = vpop.eup %966  ;;  %v500_v47 = vadd.f32 1.0, %v965_v45  ;;  %978 = verf.f32 %v487_v44 }
 0x10b   : > { %v969_v48 = vpop.eup %968  ;;  %v498_v49 = vadd.f32 1.0, %v967_v46 }
 0x10c   : > { %v971_v50 = vpop.eup %970  ;;  %v501_v53 = vadd.f32 1.0, %v969_v48  ;;  %v508_v57 = vmul.f32 %v500_v47, %v476_v51 }
 0x10d   : > { %v499_v56 = vadd.f32 1.0, %v971_v50  ;;  %v506_v59 = vmul.f32 %v498_v49, %v474_v54 }
 0x10e   : > { %v509_v58 = vmul.f32 %v501_v53, %v477_v52 }
 0x10f   : > { %v507_v60 = vmul.f32 %v499_v56, %v475_v55 }
 0x110   : > { %v523_v61 = vpack.c.bf16 %v509_v58, %v508_v57 }
 0x111   : > { %v973_v62 = vpop.eup %972  ;;  %v522_v63 = vpack.c.bf16 %v507_v60, %v506_v59 }
 0x112   : > { %v975_v0 = vpop.eup %974  ;;  %v504_v1 = vadd.f32 1.0, %v973_v62 }
 0x113   : > { %v977_v2 = vpop.eup %976  ;;  %v502_v3 = vadd.f32 1.0, %v975_v0  ;;  %912 = vmatprep.mubr.bf16.mxu1 %v522_v63 }
 0x114   : > { %v979_v4 = vpop.eup %978  ;;  %v505_v7 = vadd.f32 1.0, %v977_v2  ;;  %913 = vmatmul.mubr.bf16.vlgmr.msra.gmra.mrb[0].mxu1 %v523_v61  ;;  %v512_v11 = vmul.f32 %v504_v1, %v480_v5 }
 0x115   : > { %v503_v10 = vadd.f32 1.0, %v979_v4  ;;  %v510_v13 = vmul.f32 %v502_v3, %v478_v8 }
 0x116   : > { %v513_v12 = vmul.f32 %v505_v7, %v481_v6 }
 0x117   : > { %v511_v14 = vmul.f32 %v503_v10, %v479_v9 }
 0x118   : > { %v525_v15 = vpack.c.bf16 %v513_v12, %v512_v11 }
 0x119   : > { %v524_v16 = vpack.c.bf16 %v511_v14, %v510_v13 }
 0x11b   : > { %916 = vmatprep.mubr.bf16.mxu1 %v524_v16 }
 0x11c   : > { %917 = vmatmul.mubr.bf16.gmra.mrb[4].mxu1 %v525_v15 }
 0x1e7   : > { %v914_v18 = vpop.f32.mrb[0].mxu1 }
 0x1e8   : > { %v691_v19 = vadd.f32 %v914_v18, %v845_v17  ;;  %v624_v20 = vpop.f32.mrb[1].mxu1 }
 0x1e9   : > { %v689_v21 = vadd.f32 %v845_v17, %v624_v20  ;;  %v915_v22 = vpop.f32.mrb[2].mxu1 }
 0x1ea   : > { %699 = vst [vmem:[%s291_s23 + $0x10] sm:$0xff] %v691_v19  ;;  %v692_v23 = vadd.f32 %v915_v22, %v845_v17  ;;  %v627_v24 = vpop.f32.mrb[3].mxu1 }
 0x1eb   : > { %697 = vst [vmem:[%s291_s23] sm:$0xff] %v689_v21  ;;  %v690_v25 = vadd.f32 %v845_v17, %v627_v24 }
 0x1ec   : > { %700 = vst [vmem:[%s291_s23 + $0x18] sm:$0xff] %v692_v23 }
 0x1ed   : > { %698 = vst [vmem:[%s291_s23 + $0x8] sm:$0xff] %v690_v25 }
 0x1ef   : > { %v918_v26 = vpop.f32.mrb[4].mxu1 }
 0x1f0   : > { %v695_v27 = vadd.f32 %v918_v26, %v845_v17  ;;  %v640_v28 = vpop.f32.mrb[5].mxu1 }
 0x1f1   : > { %v693_v29 = vadd.f32 %v845_v17, %v640_v28  ;;  %v919_v30 = vpop.f32.mrb[6].mxu1 }
 0x1f2   : > { %703 = vst [vmem:[%s291_s23 + $0x30] sm:$0xff] %v695_v27  ;;  %v696_v31 = vadd.f32 %v919_v30, %v845_v17  ;;  %v643_v32 = vpop.f32.mrb[7].mxu1 }
 0x1f3   : > { %701 = vst [vmem:[%s291_s23 + $0x20] sm:$0xff] %v693_v29  ;;  %v694_v33 = vadd.f32 %v845_v17, %v643_v32 }
 0x1f4   : > { %704 = vst [vmem:[%s291_s23 + $0x38] sm:$0xff] %v696_v31 }
 0x1f5   : > { %702 = vst [vmem:[%s291_s23 + $0x28] sm:$0xff] %v694_v33 }
 0x1f6 PF: > { %s15_s20 = sadd.s32 1, %s1002_s20   ;;  %s1137_s18 = smov %s998_s19 }
 0x1f7   : > { %p12_p5 = scmp.ge.s32.totalorder %s15_s20, 4   ;;  %s1138_s19 = smov %s1140_s21 }
 0x1f9   :  { %14 = sbr.rel (!%p12_p5) target bundleno = 2 (0x2), region = 87 }

</bundles_post_ra>
